<compile_context>
chip_gen: v5e
topology: v5e:2x2
jax: 0.10.0
libtpu: 0.0.40
codegen_flags: <defaults>
</compile_context>

<pallas_src>
import functools

import jax
import jax.numpy as jnp
from jax.experimental import pallas as pl
from jax.experimental.pallas import tpu as pltpu


def _round_up(x: int, m: int) -> int:
    return ((x + m - 1) // m) * m


def _classifier_kernel(x_ref, w_ref, b_ref, o_ref, *, compute_dtype):
    # x_ref: (bb, K_pad)      current batch tile (f32 in HBM, cast to compute dtype here)
    # w_ref: (K_pad, N_pad)   pre-transposed, pre-cast weight (VMEM-resident, single buffer)
    # b_ref: (1, N_pad)       bias (f32, single buffer)
    # o_ref: (bb, N_pad)
    x = x_ref[...].astype(compute_dtype)
    # Plain x @ w on the MXU; weight is already in (K, N) layout and compute dtype,
    # so no per-step cast and no chance of an in-loop transpose.  f32 accumulation.
    acc = jnp.dot(x, w_ref[...], preferred_element_type=jnp.float32)
    o_ref[...] = (acc + b_ref[...]).astype(o_ref.dtype)


def prepare_classifier_params(weight, bias, *, compute_dtype=jnp.bfloat16):
    """One-time weight prep (outside the per-call hot path).

    weight: (num_classes, in_planes) f32  (PyTorch nn.Linear layout)
    bias:   (num_classes,) f32
    Returns (w_t, b2, (N, K)):
      w_t: (K_pad, N_pad) compute_dtype  -- padded, transposed, cast once
      b2:  (1, N_pad) f32                -- padded bias row
    """
    N, K = weight.shape
    K_pad = _round_up(K, 128)
    N_pad = _round_up(N, 128)
    w = weight
    if (N_pad, K_pad) != (N, K):
        w = jnp.pad(w, ((0, N_pad - N), (0, K_pad - K)))
    w_t = jnp.transpose(w).astype(compute_dtype)          # (K_pad, N_pad)
    b = bias if N_pad == N else jnp.pad(bias, (0, N_pad - N))
    b2 = b.reshape(1, N_pad).astype(jnp.float32)
    return w_t, b2, (N, K)


def baseline_classifier(x, w_t, b2, orig_nk, *, block_b_max=512,
                        compute_dtype=jnp.bfloat16, out_dtype=None):
    """Pallas equivalent of BaselineClassifier.forward.

    x:       (B, in_planes) f32
    w_t, b2: output of prepare_classifier_params
    returns  (B, num_classes) in out_dtype (default: x.dtype)
    """
    B, K = x.shape
    N, K_orig = orig_nk
    assert K == K_orig, "weight/in_planes mismatch"
    K_pad, N_pad = w_t.shape
    out_dtype = x.dtype if out_dtype is None else out_dtype
    out_isz = jnp.dtype(out_dtype).itemsize

    # --- batch tile selection -------------------------------------------------
    # >= 2 tiles when possible so the "parallel" axis can shard across both
    # TensorCores on v7x; tiles are multiples of 8 sublanes.
    if B > block_b_max:
        bb = block_b_max
    else:
        bb = max(8, _round_up((B + 1) // 2, 8))

    # VMEM budget per grid step:
    #   x    : double-buffered f32 tile      2 * bb * K_pad * 4
    #   out  : double-buffered tile          2 * bb * N_pad * itemsize(out)
    #   w    : single-buffered (Buffered(1)) K_pad * N_pad * itemsize(compute)
    #   bias : single-buffered               N_pad * 4
    w_bytes = K_pad * N_pad * jnp.dtype(compute_dtype).itemsize + N_pad * 4

    def tiles_bytes(b):
        return 2 * b * K_pad * 4 + 2 * b * N_pad * out_isz

    VMEM_BUDGET = 48 * 1024 * 1024   # safe on v7x (64 MiB physical) and v5e/v6e
    while bb > 8 and w_bytes + tiles_bytes(bb) > VMEM_BUDGET:
        bb = max(8, (bb // 2 // 8) * 8)
    # TODO(synk): for huge heads where the single weight block alone exceeds the
    # budget (K_pad*N_pad*2 > 48 MiB), add an N grid axis to tile the class dim.
    vmem_estimate = w_bytes + tiles_bytes(bb)
    vmem_limit = min(max(vmem_estimate + (4 << 20), 32 << 20), 64 << 20)

    B_pad = _round_up(B, bb)
    n_tiles = B_pad // bb

    # --- input padding (batch rows + K lanes; weight/bias already padded) -----
    x_p = x
    if B_pad != B or K_pad != K:
        x_p = jnp.pad(x, ((0, B_pad - B), (0, K_pad - K)))

    flops = 2 * B_pad * K_pad * N_pad
    bytes_accessed = (
        x_p.size * x_p.dtype.itemsize
        + w_t.size * w_t.dtype.itemsize
        + b2.size * b2.dtype.itemsize
        + B_pad * N_pad * out_isz
    )

    out = pl.pallas_call(
        functools.partial(_classifier_kernel, compute_dtype=compute_dtype),
        out_shape=jax.ShapeDtypeStruct((B_pad, N_pad), out_dtype),
        grid_spec=pltpu.PrefetchScalarGridSpec(
            num_scalar_prefetch=0,
            grid=(n_tiles,),
            in_specs=[
                # x: tiled along batch, double-buffered by default.
                pl.BlockSpec((bb, K_pad), lambda i: (i, 0)),
                # weight / bias: constant blocks -> fetched once, single-buffered.
                pl.BlockSpec((K_pad, N_pad), lambda i: (0, 0),
                             pipeline_mode=pl.Buffered(1)),
                pl.BlockSpec((1, N_pad), lambda i: (0, 0),
                             pipeline_mode=pl.Buffered(1)),
            ],
            out_specs=pl.BlockSpec((bb, N_pad), lambda i: (i, 0)),
        ),
        compiler_params=pltpu.CompilerParams(
            # Batch tiles are independent -> megacore sharding on v7x.
            dimension_semantics=("parallel",),
            vmem_limit_bytes=vmem_limit,
        ),
        cost_estimate=pl.CostEstimate(
            flops=flops, transcendentals=0, bytes_accessed=bytes_accessed
        ),
    )(x_p, w_t, b2)

    # Strip the batch / class padding.
    return out[:B, :N]


if __name__ == "__main__":
    key = jax.random.PRNGKey(0)
    k_x, k_w = jax.random.split(key)

    B = 8            # batch
    in_planes = 32   # feature dim
    num_classes = 16

    # Deterministic init mirroring weights_init_classifier:
    #   weight ~ N(0, 0.001), bias = 0
    weight = 0.001 * jax.random.normal(k_w, (num_classes, in_planes), jnp.float32)
    bias = jnp.zeros((num_classes,), jnp.float32)

    x = jax.random.normal(k_x, (B, in_planes), jnp.float32)

    # One-time weight prep (pad + transpose + cast), then the hot-path call.
    w_t, b2, nk = prepare_classifier_params(weight, bias)
    out = baseline_classifier(x, w_t, b2, nk)
    out = jax.block_until_ready(out)

    # Reference: same math with the same bf16-input / f32-accumulate precision.
    ref_bf16 = jnp.dot(
        x.astype(jnp.bfloat16), weight.astype(jnp.bfloat16).T,
        preferred_element_type=jnp.float32,
    ) + bias
    # Full-f32 reference for a sanity bound.
    ref_f32 = x @ weight.T + bias

    assert out.shape == (B, num_classes)
    assert out.dtype == jnp.float32
    assert jnp.allclose(out, ref_bf16, atol=1e-5, rtol=1e-4)
    assert jnp.allclose(out, ref_f32, atol=2e-3, rtol=5e-2)

    print("KERNEL_OK")
</pallas_src>

<mosaic_0001>
module attributes {stable_mosaic.version = 11 : i64} {
  func.func @_classifier_kernel(%arg0: i32, %arg1: memref<8x128xf32, #tpu.memory_space<vmem>>, %arg2: memref<128x128xbf16, #tpu.memory_space<vmem>>, %arg3: memref<1x128xf32, #tpu.memory_space<vmem>>, %arg4: memref<8x128xf32, #tpu.memory_space<vmem>>) attributes {dimension_semantics = [#tpu.dimension_semantics<parallel>], iteration_bounds = array<i64: 1>, scalar_prefetch = 0 : i64, scratch_operands = 0 : i64, tpu.core_type = #tpu.core_type<tc>, window_params = [{transform_indices = @transform_0, window_bounds = array<i64: 8, 128>}, {pipeline_mode = #tpu.pipeline_mode<synchronous>, transform_indices = @transform_1, window_bounds = array<i64: 128, 128>}, {pipeline_mode = #tpu.pipeline_mode<synchronous>, transform_indices = @transform_2, window_bounds = array<i64: 1, 128>}, {transform_indices = @transform_3, window_bounds = array<i64: 8, 128>}]} {
    %c0 = arith.constant 0 : index
    %c0_0 = arith.constant 0 : index
    %0 = vector.load %arg1[%c0, %c0_0] : memref<8x128xf32, #tpu.memory_space<vmem>>, vector<8x128xf32>
    %1 = arith.truncf %0 : vector<8x128xf32> to vector<8x128xbf16>
    %c0_1 = arith.constant 0 : index
    %c0_2 = arith.constant 0 : index
    %2 = vector.load %arg2[%c0_1, %c0_2] : memref<128x128xbf16, #tpu.memory_space<vmem>>, vector<128x128xbf16>
    %cst = arith.constant dense<0.000000e+00> : vector<8x128xf32>
    %3 = tpu.matmul %1, %2, %cst {dimension_numbers = #tpu.dot_dimension_numbers<[1], [0], [0], [1], [0, 0, 1, 1], [], []>} : vector<8x128xbf16>, vector<128x128xbf16>, vector<8x128xf32> -> vector<8x128xf32>
    %c0_3 = arith.constant 0 : index
    %c0_4 = arith.constant 0 : index
    %4 = vector.load %arg3[%c0_3, %c0_4] : memref<1x128xf32, #tpu.memory_space<vmem>>, vector<1x128xf32>
    %5 = vector.broadcast %4 : vector<1x128xf32> to vector<8x128xf32>
    %6 = arith.addf %3, %5 : vector<8x128xf32>
    %c0_5 = arith.constant 0 : index
    %c0_6 = arith.constant 0 : index
    %7 = vector.load %arg4[%c0_5, %c0_6] : memref<8x128xf32, #tpu.memory_space<vmem>>, vector<8x128xf32>
    tpu.vector_store %arg4[%c0_5, %c0_6], %6 {strides = array<i32>} : memref<8x128xf32, #tpu.memory_space<vmem>>, vector<8x128xf32>,
    return
  }
  func.func @transform_0(%arg0: i32) -> (i32, i32) {
    %c0_i32 = arith.constant 0 : i32
    %c0_i32_0 = arith.constant 0 : i32
    return %arg0, %c0_i32 : i32, i32
  }
  func.func @transform_1(%arg0: i32) -> (i32, i32) {
    %c0_i32 = arith.constant 0 : i32
    %c0_i32_0 = arith.constant 0 : i32
    %c0_i32_1 = arith.constant 0 : i32
    return %c0_i32, %c0_i32_0 : i32, i32
  }
  func.func @transform_2(%arg0: i32) -> (i32, i32) {
    %c0_i32 = arith.constant 0 : i32
    %c0_i32_0 = arith.constant 0 : i32
    %c0_i32_1 = arith.constant 0 : i32
    return %c0_i32, %c0_i32_0 : i32, i32
  }
  func.func @transform_3(%arg0: i32) -> (i32, i32) {
    %c0_i32 = arith.constant 0 : i32
    %c0_i32_0 = arith.constant 0 : i32
    return %arg0, %c0_i32 : i32, i32
  }
}

</mosaic_0001>

<bundles_post_ra>
// kernel: tpu_custom_call.1
= control target key start
LH: loop header
LB: loop body
LE: loop exit
PB: predicated region body
PF: predicated region fallthrough
CT: control target
= control target key end

     0   :  { %8 = vsyncpa [#allocation3], 0  ;;  %s308_s0 = inlined_call_operand.hbm [shape: f32[8,128], index: 0, kind: input, shape index: {}]   ;;  %s309_s1 = inlined_call_operand.hbm [shape: bf16[128,128], index: 1, kind: input, shape index: {}]   ;;  %s310_s2 = inlined_call_operand.vmem [shape: f32[1,128], index: 2, kind: input, shape index: {}]   ;;  %s311_s3 = inlined_call_operand.hbm [shape: f32[8,128], index: 3, kind: output, shape index: {}]  }
   0x1   :  { %9 = vsyncpa [#allocation6], 0 }
   0x2   :  { %10 = vsyncpa [#allocation4], 0  ;;  %s16_s14 = sshll.u32 %s308_s0, 4  ;;  %s271_s15 = smov [#allocation2]   ;;  %s17_s14 = int_to_ptr.hbm [resolvable:$true] %s16_s14 }
   0x3   :  { %s18_s16 = sshll.u32 %s271_s15, 4  ;;  %s26_s19 = sshll.u32 %s309_s1, 4  ;;  %s19_s16 = int_to_ptr.vmem [resolvable:$true] %s18_s16  ;;  %s27_s19 = int_to_ptr.hbm [resolvable:$true] %s26_s19 }
   0x4   :  { %21 = dma.hbm_to_vmem [thread:$0]  %s17_s14, 128, %s19_s16, [#allocation3]  }
   0x5   :  { %s272_s20 = smov [#allocation5]   ;;  %s273_s22 = smov 64  }
   0x6   :  { %s28_s21 = sshll.u32 %s272_s20, 4  ;;  %s274_s23 = smov 4   ;;  %s29_s21 = int_to_ptr.vmem [resolvable:$true] %s28_s21 }
   0x7   :  { %34 = dma.hbm_to_vmem [thread:$0]  %s27_s19, 1024, %s29_s21, [#allocation6], %s273_s22, %s273_s22, %s274_s23  }
   0x8   :  { %265 = dma.done.wait [#allocation3], 128  }
   0x9   :  { %266 = vsyncadd [#allocation3], 4294967168 }
   0xa   :  { %267 = dma.done.wait [#allocation6], 1024  }
   0xb   :  { %268 = vsyncadd [#allocation6], 4294966272  ;;  %v186_v0 = vld [vmem:[#allocation5 + $0x38] sm:$0xff]  ;;  %v185_v1 = vld [vmem:[#allocation5 + $0x30] sm:$0xff]  ;;  %s275_s24 = smov [#allocation7]   ;;  %s136_s28 = sshll.u32 %s311_s3, 4  ;;  %s137_s28 = int_to_ptr.hbm [resolvable:$true] %s136_s28 }
   0xc   :  { %115 = vmatpush.bf16.msra.mxu0 %v186_v0  ;;  %v184_v2 = vld [vmem:[#allocation5 + $0x28] sm:$0xff]  ;;  %v183_v3 = vld [vmem:[#allocation5 + $0x20] sm:$0xff]  ;;  %v182_v4 = vld [vmem:[#allocation5 + $0x18] sm:$0xff]  ;;  %s134_s25 = sshll.u32 %s275_s24, 4  ;;  %s135_s25 = int_to_ptr.vmem [resolvable:$true] %s134_s25 }
   0xd   :  { %v181_v5 = vld [vmem:[#allocation5 + $0x10] sm:$0xff]  ;;  %v180_v6 = vld [vmem:[#allocation5 + $0x8] sm:$0xff]  ;;  %v179_v7 = vld [vmem:[#allocation5] sm:$0xff] }
   0xe   :  { %v45_v8 = vld [vmem:[#allocation2] sm:$0xff] }
   0xf   :  { %v46_v9 = vpack.c.bf16 %v45_v8, %v45_v8  ;;  %v192_v10 = vld [vmem:[%s310_s2] ss:$0 sm:$0xff] }
  0x10   :  { %116 = vmatpush.bf16.msra.mxu0 %v185_v1 }
  0x14   :  { %117 = vmatpush.bf16.msra.mxu0 %v184_v2 }
  0x18   :  { %118 = vmatpush.bf16.msra.mxu0 %v183_v3 }
  0x1c   :  { %119 = vmatpush.bf16.msra.mxu0 %v182_v4 }
  0x20   :  { %120 = vmatpush.bf16.msra.mxu0 %v181_v5 }
  0x24   :  { %121 = vmatpush.bf16.msra.mxu0 %v180_v6 }
  0x28   :  { %122 = vmatpush.bf16.msra.mxu0 %v179_v7 }
  0x2b   :  { %123 = vmatmul.bf16.vlgmr.msra.gmra.mxu0 %v46_v9 }
  0xa8   :  { %v124_v11 = vpop.f32.mrf.mxu0 }
  0xa9   :  { %v125_v12 = vadd.f32 %v192_v10, %v124_v11 }
  0xab   :  { %128 = vst [vmem:[#allocation7] sm:$0xff] %v125_v12 }
  0xac   :  { %139 = dma.vmem_to_hbm [thread:$0]  %s135_s25, 128, %s137_s28, [#allocation4]  }
  0xb0   :  { %v126_v13 = vpop.f32.mrf.mxu0 }
  0xb1   :  { %269 = dma.done.wait [#allocation4], 128  }
  0xb2   :  { %270 = vsyncadd [#allocation4], 4294967168 }
  0xb3   :  { %144 = vsyncpa [#allocation3], 1 }
  0xb4   :  { %145 = vsyncpa [#allocation6], 1 }
  0xb5   :  { %146 = vsyncpa [#allocation4], 1 }

</bundles_post_ra>
